<compile_context>
chip_gen: v7x
topology: tpu7x:2x2x1
jax: 0.10.0
libtpu: 0.0.40
codegen_flags: <defaults>
</compile_context>

<pallas_src>
import jax
import jax.numpy as jnp
from jax.experimental import pallas as pl
from jax.experimental.pallas import tpu as pltpu

_SQRT_HALF = 0.7071067811865476
_HEADROOM = 2 * 2**20  # compiler scratch / semaphores slack in VMEM estimates


def _gelu_exact(x):
    """Exact (erf-based) GELU matching F.gelu's default.

    erf via Abramowitz & Stegun 7.1.26 (|err| <= 1.5e-7); built from
    exp / mul / add / where plus an EUP approximate reciprocal so the
    nonlinearity hides under the MXU matmuls on every TPU generation.
    """
    z = x * _SQRT_HALF
    a = jnp.abs(z)
    t = pl.reciprocal(1.0 + 0.3275911 * a, approx=True)
    poly = t * (0.254829592 + t * (-0.284496736 + t * (1.421413741
             + t * (-1.453152027 + t * 1.061405429))))
    erf_abs = 1.0 - poly * jnp.exp(-a * a)
    erf_z = jnp.where(z >= 0.0, erf_abs, -erf_abs)
    return 0.5 * x * (1.0 + erf_z)


# ----------------------------------------------------------------------------
# Kernels
# ----------------------------------------------------------------------------
def _mlp_kernel_resident(x_ref, wfc_ref, wproj_ref, o_ref):
    """Both weight matrices fully VMEM-resident; grid = (row_tiles,)."""
    h = jnp.dot(x_ref[...], wfc_ref[...], preferred_element_type=jnp.float32)
    h = _gelu_exact(h)
    # Dropout(p=0.1): eval-mode identity (deterministic forward).
    # TODO(synk): training-mode dropout would use pltpu.prng_seed/prng_random_bits.
    h = h.astype(wproj_ref.dtype)
    o_ref[...] = jnp.dot(h, wproj_ref[...],
                         preferred_element_type=jnp.float32).astype(o_ref.dtype)


def _mlp_kernel_streaming(x_ref, wfc_ref, wproj_ref, o_ref, acc_ref):
    """Hidden (4C) dim streamed as the reduction axis; grid = (rows, hidden)."""
    k = pl.program_id(1)

    @pl.when(k == 0)
    def _():
        acc_ref[...] = jnp.zeros_like(acc_ref)

    h = jnp.dot(x_ref[...], wfc_ref[...], preferred_element_type=jnp.float32)
    h = _gelu_exact(h)
    # Dropout: eval-mode identity.
    h = h.astype(wproj_ref.dtype)
    acc_ref[...] += jnp.dot(h, wproj_ref[...], preferred_element_type=jnp.float32)

    @pl.when(k == pl.num_programs(1) - 1)
    def _():
        o_ref[...] = acc_ref[...].astype(o_ref.dtype)


# ----------------------------------------------------------------------------
# Planning helpers
# ----------------------------------------------------------------------------
def _round_up(x, m):
    return ((x + m - 1) // m) * m


def _vmem_budget_bytes():
    phys = 64 * 2**20  # conservative default (v7x) if query unavailable
    try:
        info = pltpu.get_tpu_info()
        phys = int(getattr(info, "vmem_capacity_bytes", phys)) or phys
    except Exception:
        pass
    return (phys // 4) * 3  # ~48 MiB on v7x, ~96 MiB on v5e/v6e


def _choose_row_tile(M, fits, candidates=(1024, 512, 256, 128, 64, 32, 16, 8)):
    """Largest row tile that fits VMEM, keeps >=2 tiles (megacore), and does
    not pad beyond the next multiple of 8."""
    m8 = _round_up(M, 8)
    for c in candidates:
        if c > m8:
            continue
        m_pad = _round_up(M, c)
        if M > 8 and m_pad // c < 2:
            continue  # keep >= 2 row tiles so both v7x TensorCores get work
        if fits(c):
            return c, m_pad
    return None


def _plan(M, C, H, w_isz, o_isz, budget):
    weight_bytes = 2 * C * H * w_isz  # W_fc^T + W_proj^T

    def resident_bytes(tm):
        return (2 * weight_bytes                   # weight buffers
                + 2 * tm * C * (w_isz + o_isz)     # double-buffered x / out tiles
                + tm * H * (4 + w_isz)             # f32 hidden + bf16 cast
                + _HEADROOM)

    if weight_bytes <= budget // 3:
        tile = _choose_row_tile(M, lambda tm: resident_bytes(tm) <= budget)
        if tile is not None:
            tm, m_pad = tile
            return "resident", tm, m_pad, None

    def stream_bytes(tm, th):
        return (2 * tm * C * (w_isz + o_isz)       # x / out tiles
                + 4 * C * th * w_isz               # double-buffered weight tiles
                + tm * C * 4                       # f32 accumulator scratch
                + tm * th * (4 + w_isz)            # f32 hidden + bf16 cast
                + _HEADROOM)

    th_cands = [c for c in (512, 256, 128) if H % c == 0]
    best = None
    for th in th_cands:
        tile = _choose_row_tile(M, lambda tm, _th=th: stream_bytes(tm, _th) <= budget)
        if tile is None:
            continue
        tm, m_pad = tile
        if best is None or (tm, th) > (best[1], best[3]):
            best = ("streaming", tm, m_pad, th)
    if best is not None:
        return best
    # Best-effort fallback for awkward shapes (H not a multiple of 128, or
    # pathological C): smallest tiles.
    if th_cands:
        return "streaming", 8, _round_up(M, 8), th_cands[-1]
    return "resident", 8, _round_up(M, 8), None


# ----------------------------------------------------------------------------
# Public wrappers
# ----------------------------------------------------------------------------
def prepare_mlp_weights(w_fc, w_proj, compute_dtype=jnp.bfloat16):
    """One-time weight prep (torch (out,in) layout -> (in,out) + MXU dtype).

    Call once at parameter-load time so each forward pass avoids an extra HBM
    round-trip for the transpose / cast.
    """
    H, C = w_fc.shape
    assert w_proj.shape == (C, H)
    wfc_t = jnp.asarray(jnp.transpose(w_fc), dtype=compute_dtype)      # (C, H)
    wproj_t = jnp.asarray(jnp.transpose(w_proj), dtype=compute_dtype)  # (H, C)
    return wfc_t, wproj_t


def mlp_forward(x, wfc_t, wproj_t):
    """x: (..., C); wfc_t: (C, 4C), wproj_t: (4C, C) pre-transposed, bf16."""
    orig_shape = x.shape
    C = orig_shape[-1]
    Cw, H = wfc_t.shape
    assert Cw == C and wproj_t.shape == (H, C)
    compute_dtype = wfc_t.dtype

    M = 1
    for s in orig_shape[:-1]:
        M *= s
    x2 = x.reshape(M, C).astype(compute_dtype)

    budget = _vmem_budget_bytes()
    w_isz = jnp.dtype(compute_dtype).itemsize
    o_isz = jnp.dtype(x.dtype).itemsize

    mode, tm, m_pad, th = _plan(M, C, H, w_isz, o_isz, budget)
    if m_pad != M:
        x2 = jnp.pad(x2, ((0, m_pad - M), (0, 0)))

    if mode == "resident":
        out = pl.pallas_call(
            _mlp_kernel_resident,
            out_shape=jax.ShapeDtypeStruct((m_pad, C), x.dtype),
            grid_spec=pltpu.PrefetchScalarGridSpec(
                num_scalar_prefetch=0,
                grid=(m_pad // tm,),
                in_specs=[
                    pl.BlockSpec((tm, C), lambda i: (i, 0)),   # x row tile
                    pl.BlockSpec((C, H), lambda i: (0, 0)),    # W_fc^T, resident
                    pl.BlockSpec((H, C), lambda i: (0, 0)),    # W_proj^T, resident
                ],
                out_specs=pl.BlockSpec((tm, C), lambda i: (i, 0)),
            ),
            compiler_params=pltpu.CompilerParams(
                dimension_semantics=("parallel",),
                vmem_limit_bytes=budget,
            ),
        )(x2, wfc_t, wproj_t)
    else:
        out = pl.pallas_call(
            _mlp_kernel_streaming,
            out_shape=jax.ShapeDtypeStruct((m_pad, C), x.dtype),
            grid_spec=pltpu.PrefetchScalarGridSpec(
                num_scalar_prefetch=0,
                grid=(m_pad // tm, H // th),
                in_specs=[
                    pl.BlockSpec((tm, C), lambda i, k: (i, 0)),   # x row tile
                    pl.BlockSpec((C, th), lambda i, k: (0, k)),   # W_fc^T hidden tile
                    pl.BlockSpec((th, C), lambda i, k: (k, 0)),   # W_proj^T hidden tile
                ],
                out_specs=pl.BlockSpec((tm, C), lambda i, k: (i, 0)),
                scratch_shapes=[pltpu.VMEM((tm, C), jnp.float32)],
            ),
            compiler_params=pltpu.CompilerParams(
                dimension_semantics=("parallel", "arbitrary"),
                vmem_limit_bytes=budget,
            ),
        )(x2, wfc_t, wproj_t)

    if m_pad != M:
        out = out[:M]
    return out.reshape(orig_shape)


# ----------------------------------------------------------------------------
# Reference & self-test
# ----------------------------------------------------------------------------
def _reference(x, w_fc, w_proj):
    """Pure-JAX f32 reference mirroring the PyTorch forward (eval mode)."""
    h = jnp.dot(x, w_fc.T, precision=jax.lax.Precision.HIGHEST)
    h = jax.nn.gelu(h, approximate=False)
    return jnp.dot(h, w_proj.T, precision=jax.lax.Precision.HIGHEST)


def _orthogonal(key, out_dim, in_dim):
    big, small = max(out_dim, in_dim), min(out_dim, in_dim)
    a = jax.random.normal(key, (big, small), dtype=jnp.float32)
    q, _ = jnp.linalg.qr(a)            # (big, small), orthonormal columns
    return q if out_dim >= in_dim else q.T


if __name__ == "__main__":
    B, T, d_model = 2, 8, 32           # hidden = 4 * d_model = 128

    key = jax.random.PRNGKey(0)
    kx, kfc, kproj = jax.random.split(key, 3)

    x = jax.random.normal(kx, (B, T, d_model), dtype=jnp.float32)
    w_fc = _orthogonal(kfc, 4 * d_model, d_model)      # (4C, C) torch layout
    w_proj = _orthogonal(kproj, d_model, 4 * d_model)  # (C, 4C) torch layout

    # One-time weight prep (transpose + bf16 cast), hoisted out of the forward.
    wfc_t, wproj_t = prepare_mlp_weights(w_fc, w_proj)

    fwd = jax.jit(mlp_forward)
    out = jax.block_until_ready(fwd(x, wfc_t, wproj_t))

    ref = _reference(x, w_fc, w_proj)
    assert out.shape == x.shape
    max_err = float(jnp.max(jnp.abs(out - ref)))
    # bf16 MXU operands -> compare against the f32 reference at bf16 tolerance.
    assert jnp.allclose(out, ref, atol=2e-2, rtol=2e-2), max_err

    print("KERNEL_OK")
</pallas_src>

<mosaic_0001>
module attributes {stable_mosaic.version = 11 : i64} {
  func.func @_mlp_kernel_resident(%arg0: i32, %arg1: memref<8x32xbf16, #tpu.memory_space<vmem>>, %arg2: memref<32x128xbf16, #tpu.memory_space<vmem>>, %arg3: memref<128x32xbf16, #tpu.memory_space<vmem>>, %arg4: memref<8x32xf32, #tpu.memory_space<vmem>>) attributes {dimension_semantics = [#tpu.dimension_semantics<parallel>], iteration_bounds = array<i64: 2>, scalar_prefetch = 0 : i64, scratch_operands = 0 : i64, tpu.core_type = #tpu.core_type<tc>, window_params = [{transform_indices = @transform_0, window_bounds = array<i64: 8, 32>}, {pipeline_mode = #tpu.pipeline_mode<synchronous>, transform_indices = @transform_1, window_bounds = array<i64: 32, 128>}, {pipeline_mode = #tpu.pipeline_mode<synchronous>, transform_indices = @transform_2, window_bounds = array<i64: 128, 32>}, {transform_indices = @transform_3, window_bounds = array<i64: 8, 32>}]} {
    %c0 = arith.constant 0 : index
    %c0_0 = arith.constant 0 : index
    %0 = vector.load %arg1[%c0, %c0_0] : memref<8x32xbf16, #tpu.memory_space<vmem>>, vector<8x32xbf16>
    %c0_1 = arith.constant 0 : index
    %c0_2 = arith.constant 0 : index
    %1 = vector.load %arg2[%c0_1, %c0_2] : memref<32x128xbf16, #tpu.memory_space<vmem>>, vector<32x128xbf16>
    %cst = arith.constant dense<0.000000e+00> : vector<8x128xf32>
    %2 = tpu.matmul %0, %1, %cst {dimension_numbers = #tpu.dot_dimension_numbers<[1], [0], [0], [1], [0, 0, 1, 1], [], []>} : vector<8x32xbf16>, vector<32x128xbf16>, vector<8x128xf32> -> vector<8x128xf32>
    %cst_3 = arith.constant 0.707106769 : f32
    %3 = vector.broadcast %cst_3 : f32 to vector<8x128xf32>
    %4 = arith.mulf %2, %3 : vector<8x128xf32>
    %5 = math.absf %4 : vector<8x128xf32>
    %cst_4 = arith.constant 0.327591091 : f32
    %6 = vector.broadcast %cst_4 : f32 to vector<8x128xf32>
    %7 = arith.mulf %6, %5 : vector<8x128xf32>
    %cst_5 = arith.constant 1.000000e+00 : f32
    %8 = vector.broadcast %cst_5 : f32 to vector<8x128xf32>
    %9 = arith.addf %8, %7 : vector<8x128xf32>
    %10 = tpu.reciprocal %9 {approx = true} : vector<8x128xf32> -> vector<8x128xf32>
    %cst_6 = arith.constant 1.06140542 : f32
    %11 = vector.broadcast %cst_6 : f32 to vector<8x128xf32>
    %12 = arith.mulf %10, %11 : vector<8x128xf32>
    %cst_7 = arith.constant -1.45315206 : f32
    %13 = vector.broadcast %cst_7 : f32 to vector<8x128xf32>
    %14 = arith.addf %13, %12 : vector<8x128xf32>
    %15 = arith.mulf %10, %14 : vector<8x128xf32>
    %cst_8 = arith.constant 1.42141378 : f32
    %16 = vector.broadcast %cst_8 : f32 to vector<8x128xf32>
    %17 = arith.addf %16, %15 : vector<8x128xf32>
    %18 = arith.mulf %10, %17 : vector<8x128xf32>
    %cst_9 = arith.constant -0.284496725 : f32
    %19 = vector.broadcast %cst_9 : f32 to vector<8x128xf32>
    %20 = arith.addf %19, %18 : vector<8x128xf32>
    %21 = arith.mulf %10, %20 : vector<8x128xf32>
    %cst_10 = arith.constant 0.254829586 : f32
    %22 = vector.broadcast %cst_10 : f32 to vector<8x128xf32>
    %23 = arith.addf %22, %21 : vector<8x128xf32>
    %24 = arith.mulf %10, %23 : vector<8x128xf32>
    %cst_11 = arith.constant 0.000000e+00 : f32
    %25 = vector.broadcast %cst_11 : f32 to vector<8x128xf32>
    %26 = arith.subf %25, %5 : vector<8x128xf32>
    %27 = arith.mulf %26, %5 : vector<8x128xf32>
    %28 = math.exp %27 : vector<8x128xf32>
    %29 = arith.mulf %24, %28 : vector<8x128xf32>
    %cst_12 = arith.constant 1.000000e+00 : f32
    %30 = vector.broadcast %cst_12 : f32 to vector<8x128xf32>
    %31 = arith.subf %30, %29 : vector<8x128xf32>
    %cst_13 = arith.constant 0.000000e+00 : f32
    %32 = vector.broadcast %cst_13 : f32 to vector<8x128xf32>
    %33 = arith.cmpf oge, %4, %32 : vector<8x128xf32>
    %cst_14 = arith.constant 0.000000e+00 : f32
    %34 = vector.broadcast %cst_14 : f32 to vector<8x128xf32>
    %35 = arith.subf %34, %31 : vector<8x128xf32>
    %36 = arith.select %33, %31, %35 : vector<8x128xi1>, vector<8x128xf32>
    %cst_15 = arith.constant 5.000000e-01 : f32
    %37 = vector.broadcast %cst_15 : f32 to vector<8x128xf32>
    %38 = arith.mulf %37, %2 : vector<8x128xf32>
    %cst_16 = arith.constant 1.000000e+00 : f32
    %39 = vector.broadcast %cst_16 : f32 to vector<8x128xf32>
    %40 = arith.addf %39, %36 : vector<8x128xf32>
    %41 = arith.mulf %38, %40 : vector<8x128xf32>
    %42 = arith.truncf %41 : vector<8x128xf32> to vector<8x128xbf16>
    %c0_17 = arith.constant 0 : index
    %c0_18 = arith.constant 0 : index
    %43 = vector.load %arg3[%c0_17, %c0_18] : memref<128x32xbf16, #tpu.memory_space<vmem>>, vector<128x32xbf16>
    %cst_19 = arith.constant dense<0.000000e+00> : vector<8x32xf32>
    %44 = tpu.matmul %42, %43, %cst_19 {dimension_numbers = #tpu.dot_dimension_numbers<[1], [0], [0], [1], [0, 0, 1, 1], [], []>} : vector<8x128xbf16>, vector<128x32xbf16>, vector<8x32xf32> -> vector<8x32xf32>
    %c0_20 = arith.constant 0 : index
    %c0_21 = arith.constant 0 : index
    %45 = vector.load %arg4[%c0_20, %c0_21] : memref<8x32xf32, #tpu.memory_space<vmem>>, vector<8x32xf32>
    tpu.vector_store %arg4[%c0_20, %c0_21], %44 {strides = array<i32>} : memref<8x32xf32, #tpu.memory_space<vmem>>, vector<8x32xf32>,
    return
  }
  func.func @transform_0(%arg0: i32) -> (i32, i32) {
    %c0_i32 = arith.constant 0 : i32
    %c0_i32_0 = arith.constant 0 : i32
    return %arg0, %c0_i32 : i32, i32
  }
  func.func @transform_1(%arg0: i32) -> (i32, i32) {
    %c0_i32 = arith.constant 0 : i32
    %c0_i32_0 = arith.constant 0 : i32
    %c0_i32_1 = arith.constant 0 : i32
    return %c0_i32, %c0_i32_0 : i32, i32
  }
  func.func @transform_2(%arg0: i32) -> (i32, i32) {
    %c0_i32 = arith.constant 0 : i32
    %c0_i32_0 = arith.constant 0 : i32
    %c0_i32_1 = arith.constant 0 : i32
    return %c0_i32, %c0_i32_0 : i32, i32
  }
  func.func @transform_3(%arg0: i32) -> (i32, i32) {
    %c0_i32 = arith.constant 0 : i32
    %c0_i32_0 = arith.constant 0 : i32
    return %arg0, %c0_i32 : i32, i32
  }
}

</mosaic_0001>

<bundles_post_ra>
// kernel: mlp_forward.1
= control target key start
LH: loop header
LB: loop body
LE: loop exit
PB: predicated region body
PF: predicated region fallthrough
CT: control target
= control target key end

     0   :  { %8 = vsyncpa [#allocation3], 0  ;;  %s768_s0 = inlined_call_operand.vmem [shape: bf16[16,32], index: 0, kind: input, shape index: {}]   ;;  %s769_s1 = inlined_call_operand.vmem [shape: bf16[32,128], index: 1, kind: input, shape index: {}]   ;;  %s770_s2 = inlined_call_operand.vmem [shape: bf16[128,32], index: 2, kind: input, shape index: {}]   ;;  %s771_s3 = inlined_call_operand.hbm [shape: f32[16,32], index: 3, kind: output, shape index: {}]  }
   0x1   :  { %10 = vsyncpa [#allocation3 + $0x1], 0  ;;  %s636_s12 = smov 0   ;;  %s638_s13 = smov 0  }
   0x2   :  { %s640_s14 = smov 0   ;;  %s642_s15 = smov 0  }
   0x3 LB: > { %s657_s16 = sadd.s32 4294967295, %s611_s15   ;;  %s433_s17 = sadd.s32 4294967294, %s611_s15   ;;  %s611_s15 = sphi %s642_s15, %s777_s15   ;;  %s607_s14 = sphi %s640_s14, %s776_s14   ;;  %s603_s13 = sphi %s638_s13, %s775_s13   ;;  %s599_s12 = sphi %s636_s12, %s774_s12  }
   0x4   : > { %s661_s18 = sadd.s32 1, %s611_s15   ;;  %s91_s19 = sadd.s32 1, %s607_s14 }
   0x5   : > { %s88_s20 = ssub.s32 %s611_s15, %s661_s18  ;;  %p101_p0 = scmp.ne.s32.totalorder %s607_s14, %s603_s13 }
   0x6   : > { %p89_p1 = scmp.eq.s32.totalorder %s88_s20, 0  ;;  %p102_p2 = scmp.eq.s32.totalorder %s657_s16, 1 }
   0x7   : > { %p107_p3 = scmp.ne.s32.totalorder %s603_s13, %s599_s12  ;;  %p108_p4 = scmp.eq.s32.totalorder %s433_s17, 1 }
   0x8   : > { %s672_s21 = scalar_select %p89_p1, %s607_s14, %s91_s19  }
   0x9   : > { %p674_p5 = por %p102_p2, %p101_p0  ;;  %p678_p6 = por %p108_p4, %p107_p3 }
   0xa   : > { %p436_p7 = scmp.ge.s32.totalorder %s611_s15, 1  ;;  %p139_p8 = scmp.lt.s32.totalorder %s611_s15, 3 }
   0xc   : > { %p140_p9 = pnand %p436_p7, %p139_p8 }
   0xd   : > { %v535_v0 = vld [vmem:[%s769_s1] sm:$0xff] (!%p140_p9)   ;;  %v613_v1 = vmov (!%p140_p9), 0.0   ;;  %v536_v2 = vld [vmem:[%s769_s1 + $0x8] sm:$0xff] (!%p140_p9)   ;;  %vm614_vm0 = vmmov (!%p140_p9), 0   ;;  %p162_p10 = scmp.lt.s32.totalorder (!%p140_p9), %s657_s16, 1  ;;  %vm184_vm1 = vcmask (!%p140_p9), 261120  }
   0xe   : > { %143 = sbr.rel (%p140_p9) target bundleno = 515 (0x203), region = 32  ;;  %466 = vmatprep.subr.bf16.mxu0 (!%p140_p9), %v613_v1  ;;  %474 = vmatprep.subr.bf16.mxu1 (!%p140_p9), %v613_v1  ;;  %v537_v4 = vld [vmem:[%s770_s2] sm:$0xff] (!%p140_p9)   ;;  %v538_v5 = vld [vmem:[%s770_s2 + $0x8] sm:$0xff] (!%p140_p9)   ;;  %v539_v6 = vld [vmem:[%s770_s2 + $0x10] sm:$0xff] (!%p140_p9)   ;;  %s159_s4 = sand.u32 (!%p140_p9), 1, %s603_s13  }
   0xf   : > { %467 = vmatpush3.bf16.msra.mxu0 (!%p140_p9), %v535_v0  ;;  %470 = vmatprep.mubr.msk.bf16.mxu0 (!%p140_p9), %vm614_vm0, %v613_v1  ;;  %v540_v7 = vld [vmem:[%s770_s2 + $0x18] sm:$0xff] (!%p140_p9)   ;;  %v541_v8 = vld [vmem:[%s770_s2 + $0x20] sm:$0xff] (!%p140_p9)   ;;  %v542_v9 = vld [vmem:[%s770_s2 + $0x28] sm:$0xff] (!%p140_p9)   ;;  %s451_s6 = sshll.u32 (!%p140_p9), %s657_s16, 7  ;;  %s361_s17 = scalar_lea.sflag (!%p140_p9), [#allocation3], %s159_s4 }
  0x10   : > { %468 = vmatprep.subr.bf16.mxu0 (!%p140_p9), %v613_v1  ;;  %490 = vmatprep.mubr.msk.bf16.mxu1 (!%p140_p9), %vm614_vm0, %v613_v1  ;;  %v543_v10 = vld [vmem:[%s770_s2 + $0x30] sm:$0xff] (!%p140_p9)   ;;  %v544_v11 = vld [vmem:[%s770_s2 + $0x38] sm:$0xff] (!%p140_p9)   ;;  %s725_s11 = scalar_lea.hbm (!%p140_p9), %s771_s3, %s451_s6 }
  0x11   : > { %475 = vmatpush3.bf16.msra.mxu1 (!%p140_p9), %v537_v4 }
  0x12   : > { %476 = vmatprep.subr.bf16.mxu1 (!%p140_p9), %v613_v1 }
  0x13   : > { %469 = vmatpush3.bf16.msra.mxu0 (!%p140_p9), %v536_v2 }
  0x15   : > { %s163_s28 = scalar_select %p162_p10, %s657_s16, 1  ;;  %477 = vmatpush3.bf16.msra.mxu1 %v538_v5 }
  0x16   : > { %478 = vmatprep.subr.bf16.mxu1 %v613_v1  ;;  %s615_s16 = smov [#allocation2]  }
  0x17   : > { %s438_s29 = sshll.u32 %s163_s28, 2  ;;  %s553_s20 = sshll.u32 %s615_s16, 4  ;;  %s554_s20 = int_to_ptr.vmem [resolvable:$false] %s553_s20 }
  0x18   : > { %s165_s5 = scalar_lea.vmem %s768_s0, %s438_s29  ;;  %s555_s24 = scalar_lea.vmem %s554_s20, 256 }
  0x19   : > { %v167_v3 = vld [vmem:[%s165_s5] sm:$0xf]  ;;  %479 = vmatpush3.bf16.msra.mxu1 %v539_v6  ;;  %s437_s5 = sshll.u32 %s159_s4, 3 }
  0x1a   : > { %471 = vmatmul.mubr.msk.bf16.vlgmr.msra.gmra.mrb[0].mxu0 %vm184_vm1, %v167_v3  ;;  %480 = vmatprep.subr.bf16.mxu1 %v613_v1  ;;  %s161_s7 = scalar_lea.vmem [#allocation2], %s437_s5 }
  0x1b   : > { %s374_s8 = sshll.u32 %s161_s7, 4  ;;  %s727_s8 = int_to_ptr.vmem [resolvable:$true] %s374_s8 }
  0x1c   : > { %s549_s19 = scalar_lea.vmem %s727_s8, 128  ;;  %p556_p0 = scmp.lt.s32.totalorder %s727_s8, %s554_s20 }
  0x1d   : > { %481 = vmatpush3.bf16.msra.mxu1 %v540_v7  ;;  %p550_p11 = scmp.ne.s32.totalorder %s727_s8, %s549_s19  ;;  %p557_p1 = scmp.lt.s32.totalorder %s555_s24, %s549_s19 }
  0x1e   : > { %482 = vmatprep.subr.bf16.mxu1 %v613_v1 }
  0x1f   : > { %p551_p12 = pnand %p550_p11, %p674_p5  ;;  %p558_p2 = por %p557_p1, %p556_p0 }
  0x21   : > { %483 = vmatpush3.bf16.msra.mxu1 %v541_v8  ;;  %p552_p13 = pneg %p551_p12 }
  0x22   : > { %484 = vmatprep.subr.bf16.mxu1 %v613_v1 }
  0x23   : > { %p559_p3 = pnand %p558_p2, %p552_p13 }
  0x25   : > { %485 = vmatpush3.bf16.msra.mxu1 %v542_v9 }
  0x26   : > { %486 = vmatprep.subr.bf16.mxu1 %v613_v1 }
  0x29   : > { %487 = vmatpush3.bf16.msra.mxu1 %v543_v10 }
  0x2a   : > { %488 = vmatprep.subr.bf16.mxu1 %v613_v1 }
  0x2d   : > { %489 = vmatpush3.bf16.msra.mxu1 %v544_v11 }
  0xed   : > { %v222_v12 = vpop.f32.mrb[0].mxu0 }
  0xee   : > { %v228_v13 = vmul.f32 0.70710677, %v222_v12  ;;  %v472_v14 = vpop.f32.mrb[1].mxu0  ;;  %v251_v38 = vmul.f32 0.5, %v222_v12 }
  0xef   : > { %v225_v15 = vpop.f32.mrb[2].mxu0 }
  0xf0   : > { %v229_v16 = vand.u32 2147483647, %v228_v13  ;;  %v473_v17 = vpop.f32.mrb[3].mxu0  ;;  %vm248_vm2 = vcmp.ge.f32.partialorder %v228_v13, 0.0 }
  0xf2   : > { %v230_v18 = vmul.f32 0.3275911, %v229_v16  ;;  %v242_v20 = vsub.f32 0.0, %v229_v16 }
  0xf4   : > { %v231_v19 = vadd.f32 1.0, %v230_v18  ;;  %v243_v22 = vmul.f32 %v242_v20, %v229_v16 }
  0xf6   : > { %545 = vrcp.f32 %v231_v19  ;;  %v244_v25 = vmul.f32 1.442695, %v243_v22 }
  0xf8   : > { %547 = vpow2.f32 %v244_v25 }
 0x100   : > { %v546_v21 = vpop.eup %545 }
 0x101   : > { %v233_v23 = vmul.f32 1.0614054, %v546_v21 }
 0x102   : > { %v548_v33 = vpop.eup %547 }
 0x103   : > { %v234_v24 = vadd.f32 -1.4531521, %v233_v23 }
 0x105   : > { %v235_v26 = vmul.f32 %v546_v21, %v234_v24 }
 0x107   : > { %v236_v27 = vadd.f32 1.4214138, %v235_v26 }
 0x109   : > { %v237_v28 = vmul.f32 %v546_v21, %v236_v27 }
 0x10b   : > { %v238_v29 = vadd.f32 -0.28449672, %v237_v28 }
 0x10d   : > { %v239_v30 = vmul.f32 %v546_v21, %v238_v29 }
 0x10f   : > { %v240_v31 = vadd.f32 0.2548296, %v239_v30 }
 0x111   : > { %v241_v32 = vmul.f32 %v546_v21, %v240_v31 }
 0x113   : > { %v246_v34 = vmul.f32 %v548_v33, %v241_v32 }
 0x115   : > { %v247_v35 = vsub.f32 1.0, %v246_v34 }
 0x117   : > { %v249_v36 = vsub.f32 0.0, %v247_v35 }
 0x119   : > { %v250_v37 = vsel %vm248_vm2, %v247_v35, %v249_v36 }
 0x11a   : > { %v252_v39 = vadd.f32 1.0, %v250_v37 }
 0x11c   : > { %v253_v40 = vmul.f32 %v252_v39, %v251_v38 }
 0x11e   : > { %v254_v41 = vpack.c.bf16 %v253_v40, %v253_v40 }
 0x120   : > { %491 = vmatmul.mubr.bf16.vlgmr.msra.gmra.mrb[0].mxu1 %v254_v41 }
 0x1f3   : > { %v353_v42 = vpop.f32.mrb[0].mxu1 }
 0x1f4   : > { %359 = vst.msk [vmem:[%s161_s7] sm:$0xff] %vm184_vm1, %v353_v42  ;;  %v492_v43 = vpop.f32.mrb[1].mxu1 }
 0x1f5   : > { %v356_v44 = vpop.f32.mrb[2].mxu1 }
 0x1f6   : > { %562 = shalt.err (!%p559_p3)
}
 0x1f7   : > { %s563_s25 = scalar_lea.hbm %s725_s11, 128  ;;  %s567_s28 = scalar_lea.hbm %s771_s3, 256 }
 0x1f8   : > { %p564_p4 = scmp.ne.s32.totalorder %s725_s11, %s563_s25  ;;  %p568_p9 = scmp.lt.u32.totalorder %s725_s11, %s771_s3 }
 0x1f9   : > { %p569_p10 = scmp.lt.u32.totalorder %s567_s28, %s563_s25  ;;  %p571_p12 = scmp.lt.u32.totalorder %s563_s25, %s725_s11 }
 0x1fa   : > { %p565_p7 = pnand %p564_p4, %p674_p5 }
 0x1fb   : > { %p570_p11 = por %p569_p10, %p568_p9 }
 0x1fc   : > { %p566_p8 = pneg %p565_p7 }
 0x1fd   : > { %p572_p13 = por %p571_p12, %p570_p11 }
 0x1ff   : > { %p573_p0 = pnand %p572_p13, %p566_p8 }
 0x201   : > { %576 = shalt.err (!%p573_p0)
}
 0x202   : > { %494 = dma.vmem_to_hbm [thread:$0]  (%p674_p5), %s727_s8, 128, %s725_s11, %s361_s17   ;;  %v493_v45 = vpop.f32.mrb[3].mxu1 }
 0x203 PF: > { %p500_p1 = scmp.ge.s32.totalorder %s611_s15, 2  ;;  %s386_s4 = sand.u32 1, %s599_s12  }
 0x204   : > { %s387_s5 = scalar_lea.sflag [#allocation3], %s386_s4 }
 0x205   : > { %p497_p2 = pnand %p500_p1, %p678_p6 }
 0x207   : > { %594 = dma.done.wait (!%p497_p2), %s387_s5, 128  }
 0x208   : > { %596 = vsyncadd (!%p497_p2), %s387_s5, 4294967168  ;;  %p13_p3 = scmp.ge.s32.totalorder %s661_s18, 4   ;;  %s774_s12 = smov %s603_s13 }
 0x209   : > { %s775_s13 = smov %s607_s14  ;;  %s776_s14 = smov %s672_s21 }
 0x20a   : > { %s777_s15 = smov %s661_s18  ;;  %15 = sbr.rel (!%p13_p3) target bundleno = 3 (0x3), region = 67 }
 0x211   :  { %392 = vsyncpa [#allocation3], 1 }
 0x212   :  { %394 = vsyncpa [#allocation3 + $0x1], 1 }

</bundles_post_ra>
